<compile_context>
chip_gen: v7x
topology: tpu7x:2x2x1
jax: 0.10.0
libtpu: 0.0.40
codegen_flags: <defaults>
</compile_context>

<pallas_src>
import functools

import jax
import jax.numpy as jnp
from jax import lax
from jax.experimental import pallas as pl
from jax.experimental.pallas import tpu as pltpu

D = 128      # hidden dim
VOCAB = 64   # vocab size
SEQ = 10     # X = torch.randint(0, 64, (1, 10))
BATCH = 1

_LANE = 128
_SUBLANE = 8


def _round_up(x, m):
    return (x + m - 1) // m * m


def _kv_cache_kernel(tok_ref, emb_ref, wqkv_ref, bqkv_ref, wlm_ref, blm_ref,
                     out_ref, *, seq_len, d):
    s_pad = tok_ref.shape[0]
    vocab = emb_ref.shape[0]

    # --- embedding gather, in-kernel, as a one-hot matmul (MXU friendly) ----
    ids = tok_ref[...]                                               # (S_pad, 1) int32
    onehot = (ids == lax.broadcasted_iota(jnp.int32, (s_pad, vocab), 1)
              ).astype(jnp.float32)                                  # (S_pad, V)
    x = jnp.dot(onehot, emb_ref[...],
                preferred_element_type=jnp.float32)                  # (S_pad, D)

    # --- fused QKV projection: one (S_pad, 3D) matmul -------------------------
    qkv = (jnp.dot(x, wqkv_ref[...], preferred_element_type=jnp.float32)
           + bqkv_ref[...])                                          # (S_pad, 3D)
    q = qkv[:, 0:d]
    k = qkv[:, d:2 * d]
    v = qkv[:, 2 * d:3 * d]

    # --- attn = Q @ K^T @ V : contract on last dims, no explicit transpose ----
    scores = lax.dot_general(q, k, (((1,), (1,)), ((), ())),
                             preferred_element_type=jnp.float32)     # (S_pad, S_pad)

    # Zero score columns that correspond to sequence padding (their bias-only
    # K/V rows would otherwise leak into the un-normalized attention).
    col_mask = lax.broadcasted_iota(jnp.int32, (s_pad, s_pad), 1) < seq_len
    scores = jnp.where(col_mask, scores, 0.0)

    attn = jnp.dot(scores, v, preferred_element_type=jnp.float32)    # (S_pad, D)

    # --- lm_head (vocab padded to 128 lanes in the wrapper -> lane-dense store)
    out_ref[...] = (jnp.dot(attn, wlm_ref[...],
                            preferred_element_type=jnp.float32)
                    + blm_ref[...])                                  # (S_pad, V_pad)


@jax.jit
def kv_cache_forward(tokens, params):
    """tokens: (B, S) int32; returns (B, S, VOCAB) float32 logits."""
    B, S = tokens.shape
    emb = params["embedding"]                                        # (V, D)
    vocab, d = emb.shape

    s_pad = _round_up(S, _SUBLANE)
    v_pad = _round_up(vocab, _LANE)

    # Pad sequence to a sublane multiple; padded token ids are 0 (masked in kernel).
    tok = jnp.pad(tokens.astype(jnp.int32),
                  ((0, 0), (0, s_pad - S)))[..., None]               # (B, S_pad, 1)

    wqkv = params["wqkv"]                                            # (D, 3D)
    bqkv = params["bqkv"]                                            # (1, 3D)
    # Lane-dense output: pad lm_head to 128 output lanes.
    wlm = jnp.pad(params["wlm"], ((0, 0), (0, v_pad - vocab)))       # (D, V_pad)
    blm = jnp.pad(params["blm"], ((0, 0), (0, v_pad - vocab)))       # (1, V_pad)

    kernel = functools.partial(_kv_cache_kernel, seq_len=S, d=d)

    out = pl.pallas_call(
        kernel,
        out_shape=jax.ShapeDtypeStruct((B, s_pad, v_pad), jnp.float32),
        grid=(B,),
        in_specs=[
            pl.BlockSpec((None, s_pad, 1), lambda b: (b, 0, 0)),     # tokens
            pl.BlockSpec((vocab, d), lambda b: (0, 0)),              # embedding
            pl.BlockSpec((d, 3 * d), lambda b: (0, 0)),              # Wqkv
            pl.BlockSpec((1, 3 * d), lambda b: (0, 0)),              # bqkv
            pl.BlockSpec((d, v_pad), lambda b: (0, 0)),              # Wlm (padded)
            pl.BlockSpec((1, v_pad), lambda b: (0, 0)),              # blm (padded)
        ],
        out_specs=pl.BlockSpec((None, s_pad, v_pad), lambda b: (b, 0, 0)),
        compiler_params=pltpu.CompilerParams(
            dimension_semantics=("parallel",)),                      # batch across TCs
    )(tok, emb, wqkv, bqkv, wlm, blm)

    return out[:, :S, :vocab]


def init_params(key):
    ks = jax.random.split(key, 5)
    scale = 0.02
    # PyTorch Linear stores W as (out, in); we store the transpose (in, out),
    # with Wq/Wk/Wv fused along the output dim.
    return {
        "embedding": scale * jax.random.normal(ks[0], (VOCAB, D), jnp.float32),
        "wqkv": scale * jax.random.normal(ks[1], (D, 3 * D), jnp.float32),
        "bqkv": scale * jax.random.normal(ks[2], (1, 3 * D), jnp.float32),
        "wlm": scale * jax.random.normal(ks[3], (D, VOCAB), jnp.float32),
        "blm": scale * jax.random.normal(ks[4], (1, VOCAB), jnp.float32),
    }


def reference_forward(tokens, params):
    d = params["embedding"].shape[1]
    x = jnp.take(params["embedding"], tokens, axis=0)                # (B, S, D)
    qkv = jnp.einsum("bsd,de->bse", x, params["wqkv"]) + params["bqkv"][0]
    q, k, v = qkv[..., :d], qkv[..., d:2 * d], qkv[..., 2 * d:]
    attn = jnp.einsum("bqd,bkd->bqk", q, k) @ v                      # (B, S, D)
    return attn @ params["wlm"] + params["blm"][0]                   # (B, S, V)


if __name__ == "__main__":
    # TODO(synk): the PyTorch module's stateful cross-call KV-cache
    # concatenation (cache_k/cache_v) is not modeled; this implements the
    # first-call (cache is None) forward path, matching the given spec input.
    key = jax.random.PRNGKey(0)
    pkey, tkey = jax.random.split(key)
    params = init_params(pkey)
    tokens = jax.random.randint(tkey, (BATCH, SEQ), 0, VOCAB, dtype=jnp.int32)

    out = kv_cache_forward(tokens, params)
    out = jax.block_until_ready(out)

    ref = reference_forward(tokens, params)
    assert out.shape == (BATCH, SEQ, VOCAB)
    assert jnp.allclose(out, ref, rtol=1e-4, atol=1e-5)
    print("KERNEL_OK")
</pallas_src>

<mosaic_0001>
module attributes {stable_mosaic.version = 11 : i64} {
  func.func @_kv_cache_kernel(%arg0: i32, %arg1: memref<1x16x1xi32, #tpu.memory_space<vmem>>, %arg2: memref<64x128xf32, #tpu.memory_space<vmem>>, %arg3: memref<128x384xf32, #tpu.memory_space<vmem>>, %arg4: memref<1x384xf32, #tpu.memory_space<vmem>>, %arg5: memref<128x128xf32, #tpu.memory_space<vmem>>, %arg6: memref<1x128xf32, #tpu.memory_space<vmem>>, %arg7: memref<1x16x128xf32, #tpu.memory_space<vmem>>) attributes {dimension_semantics = [#tpu.dimension_semantics<parallel>], iteration_bounds = array<i64: 1>, scalar_prefetch = 0 : i64, scratch_operands = 0 : i64, tpu.core_type = #tpu.core_type<tc>, window_params = [{transform_indices = @transform_0, window_bounds = array<i64: 1, 16, 1>}, {pipeline_mode = #tpu.pipeline_mode<synchronous>, transform_indices = @transform_1, window_bounds = array<i64: 64, 128>}, {pipeline_mode = #tpu.pipeline_mode<synchronous>, transform_indices = @transform_2, window_bounds = array<i64: 128, 384>}, {pipeline_mode = #tpu.pipeline_mode<synchronous>, transform_indices = @transform_3, window_bounds = array<i64: 1, 384>}, {pipeline_mode = #tpu.pipeline_mode<synchronous>, transform_indices = @transform_4, window_bounds = array<i64: 128, 128>}, {pipeline_mode = #tpu.pipeline_mode<synchronous>, transform_indices = @transform_5, window_bounds = array<i64: 1, 128>}, {transform_indices = @transform_6, window_bounds = array<i64: 1, 16, 128>}]} {
    %c0 = arith.constant 0 : index
    %c0_0 = arith.constant 0 : index
    %c0_1 = arith.constant 0 : index
    %0 = vector.load %arg1[%c0, %c0_0, %c0_1] : memref<1x16x1xi32, #tpu.memory_space<vmem>>, vector<1x16x1xi32>
    %1 = vector.shape_cast %0 : vector<1x16x1xi32> to vector<16x1xi32>
    %2 = tpu.iota {dimensions = array<i32: 1>} : vector<16x64xi32>
    %3 = vector.broadcast %1 : vector<16x1xi32> to vector<16x64xi32>
    %4 = arith.cmpi eq, %3, %2 : vector<16x64xi32>
    %5 = arith.extui %4 : vector<16x64xi1> to vector<16x64xi32>
    %6 = arith.sitofp %5 : vector<16x64xi32> to vector<16x64xf32>
    %c0_2 = arith.constant 0 : index
    %c0_3 = arith.constant 0 : index
    %7 = vector.load %arg2[%c0_2, %c0_3] : memref<64x128xf32, #tpu.memory_space<vmem>>, vector<64x128xf32>
    %cst = arith.constant dense<0.000000e+00> : vector<16x128xf32>
    %8 = tpu.matmul %6, %7, %cst {dimension_numbers = #tpu.dot_dimension_numbers<[1], [0], [0], [1], [0, 0, 1, 1], [], []>} : vector<16x64xf32>, vector<64x128xf32>, vector<16x128xf32> -> vector<16x128xf32>
    %c0_4 = arith.constant 0 : index
    %c0_5 = arith.constant 0 : index
    %9 = vector.load %arg3[%c0_4, %c0_5] : memref<128x384xf32, #tpu.memory_space<vmem>>, vector<128x384xf32>
    %cst_6 = arith.constant dense<0.000000e+00> : vector<16x384xf32>
    %10 = tpu.matmul %8, %9, %cst_6 {dimension_numbers = #tpu.dot_dimension_numbers<[1], [0], [0], [1], [0, 0, 1, 1], [], []>} : vector<16x128xf32>, vector<128x384xf32>, vector<16x384xf32> -> vector<16x384xf32>
    %c0_7 = arith.constant 0 : index
    %c0_8 = arith.constant 0 : index
    %11 = vector.load %arg4[%c0_7, %c0_8] : memref<1x384xf32, #tpu.memory_space<vmem>>, vector<1x384xf32>
    %12 = vector.broadcast %11 : vector<1x384xf32> to vector<16x384xf32>
    %13 = arith.addf %10, %12 : vector<16x384xf32>
    %14 = vector.extract_strided_slice %13 {offsets = [0, 0], sizes = [16, 128], strides = [1, 1]} : vector<16x384xf32> to vector<16x128xf32>
    %15 = vector.extract_strided_slice %13 {offsets = [0, 128], sizes = [16, 128], strides = [1, 1]} : vector<16x384xf32> to vector<16x128xf32>
    %16 = vector.extract_strided_slice %13 {offsets = [0, 256], sizes = [16, 128], strides = [1, 1]} : vector<16x384xf32> to vector<16x128xf32>
    %cst_9 = arith.constant dense<0.000000e+00> : vector<16x16xf32>
    %17 = tpu.matmul %14, %15, %cst_9 {dimension_numbers = #tpu.dot_dimension_numbers<[1], [1], [0], [0], [0, 0, 1, 0], [], []>} : vector<16x128xf32>, vector<16x128xf32>, vector<16x16xf32> -> vector<16x16xf32>
    %18 = tpu.iota {dimensions = array<i32: 1>} : vector<16x16xi32>
    %c10_i32 = arith.constant 10 : i32
    %19 = vector.broadcast %c10_i32 : i32 to vector<16x16xi32>
    %20 = arith.cmpi slt, %18, %19 : vector<16x16xi32>
    %cst_10 = arith.constant 0.000000e+00 : f32
    %21 = vector.broadcast %cst_10 : f32 to vector<16x16xf32>
    %22 = arith.select %20, %17, %21 : vector<16x16xi1>, vector<16x16xf32>
    %cst_11 = arith.constant dense<0.000000e+00> : vector<16x128xf32>
    %23 = tpu.matmul %22, %16, %cst_11 {dimension_numbers = #tpu.dot_dimension_numbers<[1], [0], [0], [1], [0, 0, 1, 1], [], []>} : vector<16x16xf32>, vector<16x128xf32>, vector<16x128xf32> -> vector<16x128xf32>
    %c0_12 = arith.constant 0 : index
    %c0_13 = arith.constant 0 : index
    %24 = vector.load %arg5[%c0_12, %c0_13] : memref<128x128xf32, #tpu.memory_space<vmem>>, vector<128x128xf32>
    %cst_14 = arith.constant dense<0.000000e+00> : vector<16x128xf32>
    %25 = tpu.matmul %23, %24, %cst_14 {dimension_numbers = #tpu.dot_dimension_numbers<[1], [0], [0], [1], [0, 0, 1, 1], [], []>} : vector<16x128xf32>, vector<128x128xf32>, vector<16x128xf32> -> vector<16x128xf32>
    %c0_15 = arith.constant 0 : index
    %c0_16 = arith.constant 0 : index
    %26 = vector.load %arg6[%c0_15, %c0_16] : memref<1x128xf32, #tpu.memory_space<vmem>>, vector<1x128xf32>
    %27 = vector.broadcast %26 : vector<1x128xf32> to vector<16x128xf32>
    %28 = arith.addf %25, %27 : vector<16x128xf32>
    %c0_17 = arith.constant 0 : index
    %c0_18 = arith.constant 0 : index
    %c0_19 = arith.constant 0 : index
    %29 = vector.load %arg7[%c0_17, %c0_18, %c0_19] : memref<1x16x128xf32, #tpu.memory_space<vmem>>, vector<1x16x128xf32>
    %30 = vector.shape_cast %29 : vector<1x16x128xf32> to vector<16x128xf32>
    %31 = vector.shape_cast %28 : vector<16x128xf32> to vector<1x16x128xf32>
    tpu.vector_store %arg7[%c0_17, %c0_18, %c0_19], %31 {strides = array<i32>} : memref<1x16x128xf32, #tpu.memory_space<vmem>>, vector<1x16x128xf32>,
    return
  }
  func.func @transform_0(%arg0: i32) -> (i32, i32, i32) {
    %c0_i32 = arith.constant 0 : i32
    %c0_i32_0 = arith.constant 0 : i32
    %c0_i32_1 = arith.constant 0 : i32
    return %arg0, %c0_i32, %c0_i32_0 : i32, i32, i32
  }
  func.func @transform_1(%arg0: i32) -> (i32, i32) {
    %c0_i32 = arith.constant 0 : i32
    %c0_i32_0 = arith.constant 0 : i32
    %c0_i32_1 = arith.constant 0 : i32
    return %c0_i32, %c0_i32_0 : i32, i32
  }
  func.func @transform_2(%arg0: i32) -> (i32, i32) {
    %c0_i32 = arith.constant 0 : i32
    %c0_i32_0 = arith.constant 0 : i32
    %c0_i32_1 = arith.constant 0 : i32
    return %c0_i32, %c0_i32_0 : i32, i32
  }
  func.func @transform_3(%arg0: i32) -> (i32, i32) {
    %c0_i32 = arith.constant 0 : i32
    %c0_i32_0 = arith.constant 0 : i32
    %c0_i32_1 = arith.constant 0 : i32
    return %c0_i32, %c0_i32_0 : i32, i32
  }
  func.func @transform_4(%arg0: i32) -> (i32, i32) {
    %c0_i32 = arith.constant 0 : i32
    %c0_i32_0 = arith.constant 0 : i32
    %c0_i32_1 = arith.constant 0 : i32
    return %c0_i32, %c0_i32_0 : i32, i32
  }
  func.func @transform_5(%arg0: i32) -> (i32, i32) {
    %c0_i32 = arith.constant 0 : i32
    %c0_i32_0 = arith.constant 0 : i32
    %c0_i32_1 = arith.constant 0 : i32
    return %c0_i32, %c0_i32_0 : i32, i32
  }
  func.func @transform_6(%arg0: i32) -> (i32, i32, i32) {
    %c0_i32 = arith.constant 0 : i32
    %c0_i32_0 = arith.constant 0 : i32
    %c0_i32_1 = arith.constant 0 : i32
    return %arg0, %c0_i32, %c0_i32_0 : i32, i32, i32
  }
}

</mosaic_0001>

<bundles_post_ra>
// kernel: kv_cache_forward.1
= control target key start
LH: loop header
LB: loop body
LE: loop exit
PB: predicated region body
PF: predicated region fallthrough
CT: control target
= control target key end

     0   :  { %v897_v0 = vmov 0   ;;  %v898_v9 = vmov 0.0   ;;  %vm47_vm0 = vcmask 523264   ;;  %vm424_vm4 = vcmask 130048   ;;  %s1181_s0 = inlined_call_operand.vmem [shape: s32[1,16,1], index: 0, kind: input, shape index: {}]   ;;  %s1182_s1 = inlined_call_operand.vmem [shape: f32[64,128], index: 1, kind: input, shape index: {}]   ;;  %s1183_s2 = inlined_call_operand.vmem [shape: f32[128,384], index: 2, kind: input, shape index: {}]   ;;  %s1184_s3 = inlined_call_operand.vmem [shape: f32[1,384], index: 3, kind: input, shape index: {}]   ;;  %s1185_s4 = inlined_call_operand.vmem [shape: f32[128,128], index: 4, kind: input, shape index: {}]   ;;  %s1186_s5 = inlined_call_operand.vmem [shape: f32[1,128], index: 5, kind: input, shape index: {}]   ;;  %s1187_s6 = inlined_call_operand.vmem [shape: f32[1,16,128], index: 6, kind: output, shape index: {}]  }
   0x1   :  { %896 = vset.pattern.permute.xlu0 %v897_v0  ;;  %v23_v1 = vld [vmem:[%s1181_s0] sm:$0xff]  ;;  %v40_v3 = vld [vmem:[%s1182_s1 + $0x8] sm:$0xff]  ;;  %v41_v4 = vld [vmem:[%s1182_s1 + $0x10] sm:$0xff]  ;;  %258 = vmatprep.mubr.f32.mxu1 %v898_v9 }
   0x2   :  { %v39_v2 = vld [vmem:[%s1182_s1] sm:$0xff]  ;;  %28 = vperm.xlu0 %896, %v23_v1   ;;  %v42_v5 = vld [vmem:[%s1182_s1 + $0x18] sm:$0xff]  ;;  %v24_v6 = vld [vmem:[%s1181_s0 + $0x8] sm:$0xff] }
   0x3   :  { %v774_v7 = vpack.c.bf16 %v40_v3, %v39_v2  ;;  %v778_v8 = vpack.c.bf16 %v42_v5, %v41_v4  ;;  %v43_v10 = vld [vmem:[%s1182_s1 + $0x20] sm:$0xff]  ;;  %v44_v11 = vld [vmem:[%s1182_s1 + $0x28] sm:$0xff]  ;;  %v45_v13 = vld [vmem:[%s1182_s1 + $0x30] sm:$0xff]  ;;  %v25_v3 = vlaneseq }
   0x4   :  { %v782_v12 = vpack.c.bf16 %v44_v11, %v43_v10  ;;  %v46_v14 = vld [vmem:[%s1182_s1 + $0x38] sm:$0xff]  ;;  %v130_v15 = vld [vmem:[%s1183_s2 + $0x8] sm:$0xff]  ;;  %v133_v16 = vld [vmem:[%s1183_s2 + $0x20] sm:$0xff] }
   0x5   :  { %775 = vmatprep.subr.bf16.mxu0 %v774_v7  ;;  %v129_v17 = vld [vmem:[%s1183_s2] sm:$0xff]  ;;  %v790_v18 = vpack.c.bf16 %v133_v16, %v130_v15  ;;  %v132_v19 = vld [vmem:[%s1183_s2 + $0x18] sm:$0xff]  ;;  %v786_v20 = vpack.c.bf16 %v46_v14, %v45_v13  ;;  %v139_v23 = vld [vmem:[%s1183_s2 + $0x50] sm:$0xff]  ;;  %v1070_v4 = vand.u32 127, %v25_v3 }
   0x6   :  { %31 = vperm.xlu0 %896, %v24_v6   ;;  %777 = vmatpush3.bf16.msra.mxu0 %v774_v7  ;;  %v792_v21 = vpack.c.bf16 %v132_v19, %v129_v17  ;;  %v136_v22 = vld [vmem:[%s1183_s2 + $0x38] sm:$0xff]  ;;  %v135_v24 = vld [vmem:[%s1183_s2 + $0x30] sm:$0xff]  ;;  %v134_v26 = vld [vmem:[%s1183_s2 + $0x28] sm:$0xff] }
   0x7   :  { %779 = vmatprep.subr.bf16.mxu0 %v778_v8  ;;  %791 = vmatprep.subr.bf16.mxu1 %v790_v18  ;;  %v131_v25 = vld [vmem:[%s1183_s2 + $0x10] sm:$0xff]  ;;  %v794_v27 = vpack.c.bf16 %v139_v23, %v136_v22  ;;  %v138_v28 = vld [vmem:[%s1183_s2 + $0x48] sm:$0xff]  ;;  %v145_v31 = vld [vmem:[%s1183_s2 + $0x80] sm:$0xff]  ;;  %vm421_vm3 = vcmp.lt.s32.totalorder %v1070_v4, 10 }
   0x8   :  { %793 = vmatpush1.bf16.msra.mxu1 %v792_v21  ;;  %v796_v29 = vpack.c.bf16 %v138_v28, %v135_v24  ;;  %v142_v30 = vld [vmem:[%s1183_s2 + $0x68] sm:$0xff]  ;;  %v141_v33 = vld [vmem:[%s1183_s2 + $0x60] sm:$0xff]  ;;  %v144_v34 = vld [vmem:[%s1183_s2 + $0x78] sm:$0xff]  ;;  %v1007_v35 = vpack.c.bf16 %v134_v26, %v131_v25 }
   0x9   :  { %795 = vmatprep.subr.bf16.mxu1 %v794_v27  ;;  %v798_v32 = vpack.c.bf16 %v145_v31, %v142_v30  ;;  %v800_v36 = vpack.c.bf16 %v144_v34, %v141_v33  ;;  %v148_v37 = vld [vmem:[%s1183_s2 + $0x98] sm:$0xff]  ;;  %v151_v38 = vld [vmem:[%s1183_s2 + $0xb0] sm:$0xff]  ;;  %v150_v41 = vld [vmem:[%s1183_s2 + $0xa8] sm:$0xff]  ;;  %v180_v33 = vshrl.u32 %v25_v3, 7 }
   0xa   :  { %781 = vmatpush3.bf16.msra.mxu0 %v778_v8  ;;  %v802_v39 = vpack.c.bf16 %v151_v38, %v148_v37  ;;  %v147_v40 = vld [vmem:[%s1183_s2 + $0x90] sm:$0xff]  ;;  %v154_v43 = vld [vmem:[%s1183_s2 + $0xc8] sm:$0xff]  ;;  %v157_v44 = vld [vmem:[%s1183_s2 + $0xe0] sm:$0xff] }
   0xb   :  { %783 = vmatprep.subr.bf16.mxu0 %v782_v12  ;;  %v804_v42 = vpack.c.bf16 %v150_v41, %v147_v40  ;;  %v806_v45 = vpack.c.bf16 %v157_v44, %v154_v43  ;;  %v153_v46 = vld [vmem:[%s1183_s2 + $0xc0] sm:$0xff]  ;;  %v156_v47 = vld [vmem:[%s1183_s2 + $0xd8] sm:$0xff]  ;;  %v163_v50 = vld [vmem:[%s1183_s2 + $0x110] sm:$0xff]  ;;  %v181_v34 = vsub.s32 0, %v180_v33  ;;  %v185_v38 = vsub.s32 1, %v180_v33 }
   0xc   :  { %797 = vmatpush1.bf16.msra.mxu1 %v796_v29  ;;  %v808_v48 = vpack.c.bf16 %v156_v47, %v153_v46  ;;  %v160_v49 = vld [vmem:[%s1183_s2 + $0xf8] sm:$0xff]  ;;  %v159_v52 = vld [vmem:[%s1183_s2 + $0xf0] sm:$0xff]  ;;  %v162_v53 = vld [vmem:[%s1183_s2 + $0x108] sm:$0xff] }
   0xd   :  { %799 = vmatprep.subr.bf16.mxu1 %v798_v32  ;;  %v810_v51 = vpack.c.bf16 %v163_v50, %v160_v49  ;;  %v812_v54 = vpack.c.bf16 %v162_v53, %v159_v52  ;;  %v166_v55 = vld [vmem:[%s1183_s2 + $0x128] sm:$0xff]  ;;  %v169_v56 = vld [vmem:[%s1183_s2 + $0x140] sm:$0xff]  ;;  %v168_v59 = vld [vmem:[%s1183_s2 + $0x138] sm:$0xff] }
   0xe   :  { %785 = vmatpush3.bf16.msra.mxu0 %v782_v12  ;;  %v814_v57 = vpack.c.bf16 %v169_v56, %v166_v55  ;;  %v165_v58 = vld [vmem:[%s1183_s2 + $0x120] sm:$0xff]  ;;  %v172_v61 = vld [vmem:[%s1183_s2 + $0x158] sm:$0xff]  ;;  %v175_v62 = vld [vmem:[%s1183_s2 + $0x170] sm:$0xff] }
   0xf   :  { %787 = vmatprep.subr.bf16.mxu0 %v786_v20  ;;  %v816_v60 = vpack.c.bf16 %v168_v59, %v165_v58  ;;  %v818_v63 = vpack.c.bf16 %v175_v62, %v172_v61  ;;  %v171_v0 = vld [vmem:[%s1183_s2 + $0x150] sm:$0xff]  ;;  %v174_v1 = vld [vmem:[%s1183_s2 + $0x168] sm:$0xff]  ;;  %v137_v7 = vld [vmem:[%s1183_s2 + $0x40] sm:$0xff] }
  0x10   :  { %801 = vmatpush1.bf16.msra.mxu1 %v800_v36  ;;  %v820_v2 = vpack.c.bf16 %v174_v1, %v171_v0  ;;  %v140_v8 = vld [vmem:[%s1183_s2 + $0x58] sm:$0xff]  ;;  %v143_v13 = vld [vmem:[%s1183_s2 + $0x70] sm:$0xff]  ;;  %v146_v14 = vld [vmem:[%s1183_s2 + $0x88] sm:$0xff]  ;;  %v189_v36 = vsub.s32 2, %v180_v33 }
  0x11   :  { %803 = vmatprep.subr.bf16.mxu1 %v802_v39  ;;  %v826_v11 = vpack.c.bf16 %v140_v8, %v137_v7  ;;  %v830_v15 = vpack.c.bf16 %v146_v14, %v143_v13  ;;  %v149_v16 = vld [vmem:[%s1183_s2 + $0xa0] sm:$0xff]  ;;  %v152_v17 = vld [vmem:[%s1183_s2 + $0xb8] sm:$0xff]  ;;  %v155_v19 = vld [vmem:[%s1183_s2 + $0xd0] sm:$0xff] }
  0x12   :  { %789 = vmatpush3.bf16.msra.mxu0 %v786_v20  ;;  %v834_v18 = vpack.c.bf16 %v152_v17, %v149_v16  ;;  %v158_v20 = vld [vmem:[%s1183_s2 + $0xe8] sm:$0xff]  ;;  %v161_v22 = vld [vmem:[%s1183_s2 + $0x100] sm:$0xff]  ;;  %v164_v23 = vld [vmem:[%s1183_s2 + $0x118] sm:$0xff] }
  0x13   :  { %823 = vmatprep.subr.bf16.mxu0 %v1007_v35  ;;  %v838_v21 = vpack.c.bf16 %v158_v20, %v155_v19  ;;  %v842_v24 = vpack.c.bf16 %v164_v23, %v161_v22  ;;  %v167_v25 = vld [vmem:[%s1183_s2 + $0x130] sm:$0xff]  ;;  %v170_v26 = vld [vmem:[%s1183_s2 + $0x148] sm:$0xff]  ;;  %v173_v28 = vld [vmem:[%s1183_s2 + $0x160] sm:$0xff] }
  0x14   :  { %805 = vmatpush1.bf16.msra.mxu1 %v804_v42  ;;  %v846_v27 = vpack.c.bf16 %v170_v26, %v167_v25  ;;  %v176_v29 = vld [vmem:[%s1183_s2 + $0x178] sm:$0xff]  ;;  %v507_v55 = vld [vmem:[%s1185_s4 + $0x8] sm:$0xff]  ;;  %v508_v56 = vld [vmem:[%s1185_s4 + $0x10] sm:$0xff] }
  0x15   :  { %807 = vmatprep.subr.bf16.mxu1 %v806_v45  ;;  %v850_v30 = vpack.c.bf16 %v176_v29, %v173_v28  ;;  %v509_v58 = vld [vmem:[%s1185_s4 + $0x18] sm:$0xff]  ;;  %v511_v61 = vld [vmem:[%s1185_s4 + $0x28] sm:$0xff]  ;;  %v520_v13 = vld [vmem:[%s1185_s4 + $0x70] sm:$0xff] }
  0x16   :  { %v866_v59 = vpack.c.bf16 %v509_v58, %v508_v56  ;;  %v513_v0 = vld [vmem:[%s1185_s4 + $0x38] sm:$0xff]  ;;  %v515_v3 = vld [vmem:[%s1185_s4 + $0x48] sm:$0xff]  ;;  %v616_v22 = vld [vmem:[%s1186_s5] ss:$0 sm:$0xff] }
  0x17   :  { %v517_v7 = vld [vmem:[%s1185_s4 + $0x58] sm:$0xff] }
  0x18   :  { %809 = vmatpush1.bf16.msra.mxu1 %v808_v48  ;;  %v521_v14 = vld [vmem:[%s1185_s4 + $0x78] sm:$0xff] }
  0x19   :  { %811 = vmatprep.subr.bf16.mxu1 %v810_v51 }
  0x1c   :  { %813 = vmatpush1.bf16.msra.mxu1 %v812_v54  ;;  %v506_v54 = vld [vmem:[%s1185_s4] sm:$0xff] }
  0x1d   :  { %815 = vmatprep.subr.bf16.mxu1 %v814_v57  ;;  %v862_v57 = vpack.c.bf16 %v507_v55, %v506_v54 }
  0x20   :  { %817 = vmatpush1.bf16.msra.mxu1 %v816_v60  ;;  %v510_v60 = vld [vmem:[%s1185_s4 + $0x20] sm:$0xff] }
  0x21   :  { %819 = vmatprep.subr.bf16.mxu1 %v818_v63  ;;  %v870_v62 = vpack.c.bf16 %v511_v61, %v510_v60  ;;  %v512_v63 = vld [vmem:[%s1185_s4 + $0x30] sm:$0xff] }
  0x22   :  { %v874_v1 = vpack.c.bf16 %v513_v0, %v512_v63 }
  0x24   :  { %821 = vmatpush1.bf16.msra.mxu1 %v820_v2  ;;  %v514_v2 = vld [vmem:[%s1185_s4 + $0x40] sm:$0xff] }
  0x25   :  { %863 = vmatprep.subr.bf16.mxu1 %v862_v57 }
  0x81   :  { %v29_v5 = vpop.permute.xlu0 %28 }
  0x82   :  { %vm33_vm1 = vcmp.eq.s32.totalorder %v29_v5, %v1070_v4  ;;  %v878_v5 = vpack.c.bf16 %v515_v3, %v514_v2 }
  0x83   :  { %v610_v6 = vsel %vm33_vm1, 1.0, %v898_v9 }
  0x84   :  { %687 = vmatprep.mubr.msk.f32.mxu0 %vm47_vm0, %v610_v6  ;;  %v516_v6 = vld [vmem:[%s1185_s4 + $0x50] sm:$0xff] }
  0x85   :  { %v32_v10 = vpop.permute.xlu0 %31  ;;  %v882_v8 = vpack.c.bf16 %v517_v7, %v516_v6 }
  0x86   :  { %vm34_vm2 = vcmp.eq.s32.totalorder %v32_v10, %v1070_v4  ;;  %v518_v10 = vld [vmem:[%s1185_s4 + $0x60] sm:$0xff] }
  0x87   :  { %v611_v12 = vsel %vm34_vm2, 1.0, %v898_v9 }
  0x88   :  { %688 = vmatmul.mubr.msk.f32.vlgmr.msra.gmra.mrb[0].mxu0 %vm47_vm0, %v611_v12 }
  0x89   :  { %825 = vmatpush3.bf16.msra.mxu0 %v1007_v35  ;;  %v177_v35 = vld [vmem:[%s1184_s3] sm:$0x7] }
  0x8a   :  { %827 = vmatprep.subr.bf16.mxu0 %v826_v11  ;;  %v182_v37 = vrot.slane %v177_v35, %v181_v34  ;;  %v190_v39 = vrot.slane %v177_v35, %v189_v36  ;;  %v186_v44 = vrot.slane %v177_v35, %v185_v38 }
  0x8d   :  { %829 = vmatpush3.bf16.msra.mxu0 %v826_v11  ;;  %v519_v11 = vld [vmem:[%s1185_s4 + $0x68] sm:$0xff] }
  0x8e   :  { %831 = vmatprep.subr.bf16.mxu0 %v830_v15  ;;  %v886_v12 = vpack.c.bf16 %v519_v11, %v518_v10 }
  0x91   :  { %833 = vmatpush3.bf16.msra.mxu0 %v830_v15  ;;  %v890_v15 = vpack.c.bf16 %v521_v14, %v520_v13 }
  0x92   :  { %835 = vmatprep.subr.bf16.mxu0 %v834_v18 }
  0x95   :  { %837 = vmatpush3.bf16.msra.mxu0 %v834_v18 }
  0x96   :  { %839 = vmatprep.subr.bf16.mxu0 %v838_v21 }
  0x99   :  { %841 = vmatpush3.bf16.msra.mxu0 %v838_v21 }
  0x9a   :  { %843 = vmatprep.subr.bf16.mxu0 %v842_v24 }
  0x9d   :  { %845 = vmatpush3.bf16.msra.mxu0 %v842_v24 }
  0x9e   :  { %847 = vmatprep.subr.bf16.mxu0 %v846_v27 }
  0xa1   :  { %849 = vmatpush3.bf16.msra.mxu0 %v846_v27 }
  0xa2   :  { %851 = vmatprep.subr.bf16.mxu0 %v850_v30 }
  0xa5   :  { %853 = vmatpush3.bf16.msra.mxu0 %v850_v30 }
 0x15b   :  { %v689_v31 = vpop.f32.mrb[0].mxu0 }
 0x15c   :  { %v120_v32 = vpop.f32.mrb[1].mxu0 }
 0x15d   :  { %259 = vmatmul.mubr.f32.vlgmr.msra.gmra.mrb[0].mxu1 %v120_v32  ;;  %722 = vmatprep.mubr.f32.mxu0 %v120_v32 }
 0x15e   :  { %723 = vmatmul.mubr.f32.vlgmr.msra.gmra.mrb[2].mxu0 %v689_v31  ;;  %264 = vmatprep.mubr.f32.mxu1 %v898_v9 }
 0x15f   :  { %865 = vmatpush3.bf16.msra.mxu1 %v862_v57 }
 0x160   :  { %867 = vmatprep.subr.bf16.mxu1 %v866_v59 }
 0x161   :  { %265 = vmatmul.mubr.f32.gmra.mrb[2].mxu1 %v689_v31 }
 0x163   :  { %869 = vmatpush3.bf16.msra.mxu1 %v866_v59 }
 0x164   :  { %871 = vmatprep.subr.bf16.mxu1 %v870_v62 }
 0x167   :  { %873 = vmatpush3.bf16.msra.mxu1 %v870_v62 }
 0x168   :  { %875 = vmatprep.subr.bf16.mxu1 %v874_v1 }
 0x16b   :  { %877 = vmatpush3.bf16.msra.mxu1 %v874_v1 }
 0x16c   :  { %879 = vmatprep.subr.bf16.mxu1 %v878_v5 }
 0x16f   :  { %881 = vmatpush3.bf16.msra.mxu1 %v878_v5 }
 0x170   :  { %883 = vmatprep.subr.bf16.mxu1 %v882_v8 }
 0x173   :  { %885 = vmatpush3.bf16.msra.mxu1 %v882_v8 }
 0x174   :  { %887 = vmatprep.subr.bf16.mxu1 %v886_v12 }
 0x177   :  { %889 = vmatpush3.bf16.msra.mxu1 %v886_v12 }
 0x178   :  { %891 = vmatprep.subr.bf16.mxu1 %v890_v15 }
 0x17b   :  { %893 = vmatpush3.bf16.msra.mxu1 %v890_v15 }
 0x230   :  { %v260_v40 = vpop.f32.mrb[0].mxu1 }
 0x231   :  { %v261_v41 = vadd.f32 %v260_v40, %v182_v37  ;;  %v262_v42 = vpop.f32.mrb[1].mxu1  ;;  %v724_v43 = vpop.f32.mrb[2].mxu0 }
 0x232   :  { %v343_v45 = vadd.f32 %v724_v43, %v190_v39  ;;  %v337_v46 = vpop.f32.mrb[3].mxu0  ;;  %v263_v50 = vadd.f32 %v262_v42, %v186_v44 }
 0x233   :  { %v338_v47 = vadd.f32 %v337_v46, %v190_v39  ;;  %729 = vmatprep.mubr.f32.mxu0 %v261_v41 }
 0x234   :  { %v266_v9 = vpop.f32.mrb[2].mxu1 }
 0x235   :  { %v858_v48 = vpack.c.bf16 %v343_v45, %v338_v47  ;;  %v268_v49 = vpop.f32.mrb[3].mxu1  ;;  %v267_v53 = vadd.f32 %v266_v9, %v182_v37 }
 0x236   :  { %v269_v51 = vadd.f32 %v268_v49, %v186_v44 }
 0x238   :  { %v854_v52 = vpack.c.bf16 %v269_v51, %v263_v50 }
 0x23a   :  { %855 = vmatprep.subr.bf16.mxu0 %v854_v52 }
 0x23b   :  { %857 = vmatpush3.bf16.xpose.msra.mxu0 %v854_v52 }
 0x23c   :  { %859 = vmatprep.subr.bf16.mxu0 %v858_v48 }
 0x242   :  { %730 = vmatmul.mubr.f32.vlgmr.msra.gmra.mrb[4].mxu0 %v267_v53 }
 0x243   :  { %861 = vmatpush3.bf16.msra.mxu0 %v858_v48 }
 0x315   :  { %v731_v16 = vpop.f32.mrb[4].mxu0 }
 0x316   :  { %v412_v17 = vpop.f32.mrb[5].mxu0  ;;  %v423_v19 = vsel %vm421_vm3, %v731_v16, 0.0 }
 0x317   :  { %v422_v18 = vsel %vm421_vm3, %v412_v17, 0.0 }
 0x318   :  { %736 = vmatprep.mubr.msk.f32.mxu0 %vm424_vm4, %v422_v18 }
 0x319   :  { %737 = vmatmul.mubr.msk.f32.vlgmr.msra.gmra.mrb[6].mxu0 %vm424_vm4, %v423_v19 }
 0x3ec   :  { %v738_v20 = vpop.f32.mrb[6].mxu0 }
 0x3ed   :  { %v497_v21 = vpop.f32.mrb[7].mxu0 }
 0x3ee   :  { %771 = vmatprep.mubr.f32.mxu1 %v497_v21 }
 0x3ef   :  { %772 = vmatmul.mubr.f32.vlgmr.msra.gmra.mrb[4].mxu1 %v738_v20 }
 0x4c2   :  { %v773_v23 = vpop.f32.mrb[4].mxu1 }
 0x4c3   :  { %v601_v24 = vadd.f32 %v773_v23, %v616_v22  ;;  %v595_v25 = vpop.f32.mrb[5].mxu1 }
 0x4c4   :  { %v596_v26 = vadd.f32 %v616_v22, %v595_v25 }
 0x4c5   :  { %605 = vst [vmem:[%s1187_s6 + $0x8] sm:$0xff] %v601_v24 }
 0x4c6   :  { %604 = vst [vmem:[%s1187_s6] sm:$0xff] %v596_v26 }

</bundles_post_ra>
